<compile_context>
chip_gen: v5e
topology: v5e:2x2
jax: 0.10.0
libtpu: 0.0.40
codegen_flags: <defaults>
</compile_context>

<pallas_src>
import jax
import jax.numpy as jnp
from jax import lax
from jax.experimental import pallas as pl
from jax.experimental.pallas import tpu as pltpu

MAX_TILE_ROWS = 512  # 512 rows of 128 obs -> 65536 obs per grid step


def _ba_project_kernel(k_ref, cam_ref, pt_ref, out_ref):
    """Per-tile bundle-adjustment reprojection.

    k_ref   : SMEM (4,)              -> [fx, fy, cx, cy]
    cam_ref : VMEM (6, TILE_R, 128)  -> [rx, ry, rz, tx, ty, tz] planes
    pt_ref  : VMEM (3, TILE_R, 128)  -> [px, py, pz] planes
    out_ref : VMEM (2, TILE_R, 128)  -> projected (u, v) planes
    """
    rx = cam_ref[0]
    ry = cam_ref[1]
    rz = cam_ref[2]
    tx = cam_ref[3]
    ty = cam_ref[4]
    tz = cam_ref[5]
    px = pt_ref[0]
    py = pt_ref[1]
    pz = pt_ref[2]

    # Rodrigues: theta = ||rvec||, axis = rvec / theta, via one EUP rsqrt
    # (no VALU sqrt, no VALU divide).  theta = sq * rsqrt(sq) == sqrt(sq).
    sq = rx * rx + ry * ry + rz * rz
    inv_theta = lax.rsqrt(sq + 1e-16)
    theta = sq * inv_theta
    ax = rx * inv_theta
    ay = ry * inv_theta
    az = rz * inv_theta

    c = jnp.cos(theta)
    s = jnp.sin(theta)
    one_c = 1.0 - c

    oc_ax = one_c * ax
    oc_ay = one_c * ay
    oc_az = one_c * az
    s_ax = s * ax
    s_ay = s * ay
    s_az = s * az

    # R = I*cos + (1-cos)*aa^T + sin*skew(a); each row is built and consumed
    # immediately (Xc = R @ p + t) so peak live vregs stay low.
    Xc0 = ((c + oc_ax * ax) * px + (oc_ax * ay - s_az) * py
           + (oc_ax * az + s_ay) * pz + tx)
    Xc1 = ((oc_ay * ax + s_az) * px + (c + oc_ay * ay) * py
           + (oc_ay * az - s_ax) * pz + ty)
    Xc2 = ((oc_az * ax - s_ay) * px + (oc_az * ay + s_ax) * py
           + (c + oc_az * az) * pz + tz)

    # Perspective divide: EUP approx reciprocal + one Newton step (keeps the
    # fx~500-amplified u/v well inside the 1e-4 / 1e-3 tolerance).
    inv_z = pl.reciprocal(Xc2, approx=True)
    inv_z = inv_z * (2.0 - Xc2 * inv_z)

    fx = k_ref[0]
    fy = k_ref[1]
    cx = k_ref[2]
    cy = k_ref[3]
    out_ref[0] = fx * (Xc0 * inv_z) + cx
    out_ref[1] = fy * (Xc1 * inv_z) + cy


@jax.jit
def bundle_adjustment_forward(cams, points, K, cam_idx, pt_idx):
    """Equivalent of TorchBundleAdjustment.forward (obs_uv unused by forward).

    cams   : (N_cam, 6) float32  [rvec(3), tvec(3)] per camera
    points : (N_pts, 3) float32
    K      : (3, 3)     float32  camera intrinsics
    cam_idx, pt_idx: (N,) int32 per-observation indices
    returns pred_uv: (N, 2) float32
    """
    n = cam_idx.shape[0]
    n_rows = pl.cdiv(n, 128)

    # --- tile selection (static): big tiles, but keep >= 2 grid steps when
    # the problem is large enough so v7x can use both TensorCores. ---
    if n_rows <= 8:
        tile_r = max(n_rows, 1)          # single block equal to full rows dim
        n_rows_pad = tile_r
    else:
        target = min(MAX_TILE_ROWS, max(8, pl.cdiv(n_rows, 2)))
        tile_r = pl.cdiv(target, 8) * 8  # sublane-aligned block
        n_rows_pad = pl.cdiv(n_rows, tile_r) * tile_r

    n_pad = n_rows_pad * 128
    pad = n_pad - n

    # --- pad the 4-byte index vectors, NOT the gathered 36-byte f32 rows ---
    cam_idx_p = cam_idx.astype(jnp.int32)
    pt_idx_p = pt_idx.astype(jnp.int32)
    if pad:
        cam_idx_p = jnp.pad(cam_idx_p, (0, pad))   # padded lanes gather cam 0
        pt_idx_p = jnp.pad(pt_idx_p, (0, pad))     # padded lanes gather pt 0

    # --- component-major gather from the tiny transposed tables; two separate
    # pallas inputs (no concatenate -> no extra full-size HBM pass) ---
    cam_g = cams.T.astype(jnp.float32)[:, cam_idx_p].reshape(6, n_rows_pad, 128)
    pt_g = points.T.astype(jnp.float32)[:, pt_idx_p].reshape(3, n_rows_pad, 128)

    kvec = jnp.array([K[0, 0], K[1, 1], K[0, 2], K[1, 2]], dtype=jnp.float32)

    grid = (n_rows_pad // tile_r,)
    out = pl.pallas_call(
        _ba_project_kernel,
        out_shape=jax.ShapeDtypeStruct((2, n_rows_pad, 128), jnp.float32),
        grid=grid,
        in_specs=[
            pl.BlockSpec(memory_space=pltpu.MemorySpace.SMEM),        # kvec
            pl.BlockSpec((6, tile_r, 128), lambda i: (0, i, 0)),      # cam planes
            pl.BlockSpec((3, tile_r, 128), lambda i: (0, i, 0)),      # point planes
        ],
        out_specs=pl.BlockSpec((2, tile_r, 128), lambda i: (0, i, 0)),
        compiler_params=pltpu.CompilerParams(
            dimension_semantics=("parallel",)),
    )(kvec, cam_g, pt_g)

    # TODO(synk): next step for compute-bound v7x/v6e — precompute per-camera
    # R|t (N_cam x 12) in XLA and gather it in-kernel via one_hot(cam_idx) @
    # table on the MXU (drops per-obs input to 16 B and removes sin/cos from
    # the per-observation path) without regressing HBM-bound v5e.
    pred = out.reshape(2, n_pad)[:, :n]
    return pred.T  # (N, 2)


def _reference_forward(cams, points, K, cam_idx, pt_idx):
    """Pure-JAX mirror of the PyTorch forward, for verification."""
    c = cams[cam_idx]
    rvec = c[:, :3]
    tvec = c[:, 3:6]
    theta = jnp.linalg.norm(rvec, axis=1, keepdims=True)          # (N,1)
    axis = rvec / (theta + 1e-8)
    cos_t = jnp.cos(theta)[..., None]
    sin_t = jnp.sin(theta)[..., None]
    ax = axis
    Kmat = jnp.zeros((rvec.shape[0], 3, 3), dtype=jnp.float32)
    Kmat = Kmat.at[:, 0, 1].set(-ax[:, 2]).at[:, 0, 2].set(ax[:, 1])
    Kmat = Kmat.at[:, 1, 0].set(ax[:, 2]).at[:, 1, 2].set(-ax[:, 0])
    Kmat = Kmat.at[:, 2, 0].set(-ax[:, 1]).at[:, 2, 1].set(ax[:, 0])
    I = jnp.eye(3, dtype=jnp.float32)[None]
    R = I * cos_t + (1 - cos_t) * (ax[..., :, None] @ ax[..., None, :]) + sin_t * Kmat
    pts = points[pt_idx]
    Xc = (R @ pts[..., None])[..., 0] + tvec
    uv = Xc / Xc[:, 2:3]
    fx, fy = K[0, 0], K[1, 1]
    cx, cy = K[0, 2], K[1, 2]
    u = fx * uv[:, 0] + cx
    v = fy * uv[:, 1] + cy
    return jnp.stack([u, v], axis=1)


if __name__ == "__main__":
    key = jax.random.PRNGKey(0)
    k1, k2, k3, k4, k5 = jax.random.split(key, 5)

    n_cam, n_pts, n_obs = 4, 32, 256

    # Deterministic synthetic "parameters" (what __init__ would build).
    cams = jnp.concatenate(
        [
            0.1 * jax.random.normal(k1, (n_cam, 3), dtype=jnp.float32),  # rvec
            0.5 * jax.random.normal(k2, (n_cam, 3), dtype=jnp.float32),  # tvec
        ],
        axis=1,
    )                                                                    # (n_cam, 6)
    points = jax.random.normal(k3, (n_pts, 3), dtype=jnp.float32)
    points = points.at[:, 2].set(jnp.abs(points[:, 2]) + 3.0)            # keep in front
    K = jnp.array(
        [[500.0, 0.0, 320.0], [0.0, 500.0, 240.0], [0.0, 0.0, 1.0]],
        dtype=jnp.float32,
    )
    cam_idx = jax.random.randint(k4, (n_obs,), 0, n_cam, dtype=jnp.int32)
    pt_idx = jax.random.randint(k5, (n_obs,), 0, n_pts, dtype=jnp.int32)
    # obs_uv is only used for the loss outside forward; forward ignores it.

    pred_uv = bundle_adjustment_forward(cams, points, K, cam_idx, pt_idx)
    jax.block_until_ready(pred_uv)

    ref_uv = _reference_forward(cams, points, K, cam_idx, pt_idx)
    assert pred_uv.shape == (n_obs, 2)
    assert jnp.allclose(pred_uv, ref_uv, rtol=1e-4, atol=1e-3), (
        float(jnp.max(jnp.abs(pred_uv - ref_uv)))
    )
    print("KERNEL_OK")
</pallas_src>

<mosaic_0001>
module attributes {stable_mosaic.version = 11 : i64} {
  func.func @_ba_project_kernel(%arg0: i32, %arg1: memref<4xf32, #tpu.memory_space<smem>>, %arg2: memref<6x2x128xf32, #tpu.memory_space<vmem>>, %arg3: memref<3x2x128xf32, #tpu.memory_space<vmem>>, %arg4: memref<2x2x128xf32, #tpu.memory_space<vmem>>) attributes {dimension_semantics = [#tpu.dimension_semantics<parallel>], iteration_bounds = array<i64: 1>, scalar_prefetch = 0 : i64, scratch_operands = 0 : i64, tpu.core_type = #tpu.core_type<tc>, window_params = [{transform_indices = @transform_0, window_bounds = array<i64: 4>}, {transform_indices = @transform_1, window_bounds = array<i64: 6, 2, 128>}, {transform_indices = @transform_2, window_bounds = array<i64: 3, 2, 128>}, {transform_indices = @transform_3, window_bounds = array<i64: 2, 2, 128>}]} {
    %c0 = arith.constant 0 : index
    %c0_0 = arith.constant 0 : index
    %c0_1 = arith.constant 0 : index
    %0 = vector.load %arg2[%c0, %c0_0, %c0_1] : memref<6x2x128xf32, #tpu.memory_space<vmem>>, vector<1x2x128xf32>
    %1 = vector.shape_cast %0 : vector<1x2x128xf32> to vector<2x128xf32>
    %c1 = arith.constant 1 : index
    %c0_2 = arith.constant 0 : index
    %c0_3 = arith.constant 0 : index
    %2 = vector.load %arg2[%c1, %c0_2, %c0_3] : memref<6x2x128xf32, #tpu.memory_space<vmem>>, vector<1x2x128xf32>
    %3 = vector.shape_cast %2 : vector<1x2x128xf32> to vector<2x128xf32>
    %c2 = arith.constant 2 : index
    %c0_4 = arith.constant 0 : index
    %c0_5 = arith.constant 0 : index
    %4 = vector.load %arg2[%c2, %c0_4, %c0_5] : memref<6x2x128xf32, #tpu.memory_space<vmem>>, vector<1x2x128xf32>
    %5 = vector.shape_cast %4 : vector<1x2x128xf32> to vector<2x128xf32>
    %c3 = arith.constant 3 : index
    %c0_6 = arith.constant 0 : index
    %c0_7 = arith.constant 0 : index
    %6 = vector.load %arg2[%c3, %c0_6, %c0_7] : memref<6x2x128xf32, #tpu.memory_space<vmem>>, vector<1x2x128xf32>
    %7 = vector.shape_cast %6 : vector<1x2x128xf32> to vector<2x128xf32>
    %c4 = arith.constant 4 : index
    %c0_8 = arith.constant 0 : index
    %c0_9 = arith.constant 0 : index
    %8 = vector.load %arg2[%c4, %c0_8, %c0_9] : memref<6x2x128xf32, #tpu.memory_space<vmem>>, vector<1x2x128xf32>
    %9 = vector.shape_cast %8 : vector<1x2x128xf32> to vector<2x128xf32>
    %c5 = arith.constant 5 : index
    %c0_10 = arith.constant 0 : index
    %c0_11 = arith.constant 0 : index
    %10 = vector.load %arg2[%c5, %c0_10, %c0_11] : memref<6x2x128xf32, #tpu.memory_space<vmem>>, vector<1x2x128xf32>
    %11 = vector.shape_cast %10 : vector<1x2x128xf32> to vector<2x128xf32>
    %c0_12 = arith.constant 0 : index
    %c0_13 = arith.constant 0 : index
    %c0_14 = arith.constant 0 : index
    %12 = vector.load %arg3[%c0_12, %c0_13, %c0_14] : memref<3x2x128xf32, #tpu.memory_space<vmem>>, vector<1x2x128xf32>
    %13 = vector.shape_cast %12 : vector<1x2x128xf32> to vector<2x128xf32>
    %c1_15 = arith.constant 1 : index
    %c0_16 = arith.constant 0 : index
    %c0_17 = arith.constant 0 : index
    %14 = vector.load %arg3[%c1_15, %c0_16, %c0_17] : memref<3x2x128xf32, #tpu.memory_space<vmem>>, vector<1x2x128xf32>
    %15 = vector.shape_cast %14 : vector<1x2x128xf32> to vector<2x128xf32>
    %c2_18 = arith.constant 2 : index
    %c0_19 = arith.constant 0 : index
    %c0_20 = arith.constant 0 : index
    %16 = vector.load %arg3[%c2_18, %c0_19, %c0_20] : memref<3x2x128xf32, #tpu.memory_space<vmem>>, vector<1x2x128xf32>
    %17 = vector.shape_cast %16 : vector<1x2x128xf32> to vector<2x128xf32>
    %18 = arith.mulf %1, %1 : vector<2x128xf32>
    %19 = arith.mulf %3, %3 : vector<2x128xf32>
    %20 = arith.addf %18, %19 : vector<2x128xf32>
    %21 = arith.mulf %5, %5 : vector<2x128xf32>
    %22 = arith.addf %20, %21 : vector<2x128xf32>
    %cst = arith.constant 1.000000e-16 : f32
    %23 = vector.broadcast %cst : f32 to vector<2x128xf32>
    %24 = arith.addf %22, %23 : vector<2x128xf32>
    %25 = math.rsqrt %24 : vector<2x128xf32>
    %26 = arith.mulf %22, %25 : vector<2x128xf32>
    %27 = arith.mulf %1, %25 : vector<2x128xf32>
    %28 = arith.mulf %3, %25 : vector<2x128xf32>
    %29 = arith.mulf %5, %25 : vector<2x128xf32>
    %30 = math.cos %26 : vector<2x128xf32>
    %31 = math.sin %26 : vector<2x128xf32>
    %cst_21 = arith.constant 1.000000e+00 : f32
    %32 = vector.broadcast %cst_21 : f32 to vector<2x128xf32>
    %33 = arith.subf %32, %30 : vector<2x128xf32>
    %34 = arith.mulf %33, %27 : vector<2x128xf32>
    %35 = arith.mulf %33, %28 : vector<2x128xf32>
    %36 = arith.mulf %33, %29 : vector<2x128xf32>
    %37 = arith.mulf %31, %27 : vector<2x128xf32>
    %38 = arith.mulf %31, %28 : vector<2x128xf32>
    %39 = arith.mulf %31, %29 : vector<2x128xf32>
    %40 = arith.mulf %34, %27 : vector<2x128xf32>
    %41 = arith.addf %30, %40 : vector<2x128xf32>
    %42 = arith.mulf %41, %13 : vector<2x128xf32>
    %43 = arith.mulf %34, %28 : vector<2x128xf32>
    %44 = arith.subf %43, %39 : vector<2x128xf32>
    %45 = arith.mulf %44, %15 : vector<2x128xf32>
    %46 = arith.addf %42, %45 : vector<2x128xf32>
    %47 = arith.mulf %34, %29 : vector<2x128xf32>
    %48 = arith.addf %47, %38 : vector<2x128xf32>
    %49 = arith.mulf %48, %17 : vector<2x128xf32>
    %50 = arith.addf %46, %49 : vector<2x128xf32>
    %51 = arith.addf %50, %7 : vector<2x128xf32>
    %52 = arith.mulf %35, %27 : vector<2x128xf32>
    %53 = arith.addf %52, %39 : vector<2x128xf32>
    %54 = arith.mulf %53, %13 : vector<2x128xf32>
    %55 = arith.mulf %35, %28 : vector<2x128xf32>
    %56 = arith.addf %30, %55 : vector<2x128xf32>
    %57 = arith.mulf %56, %15 : vector<2x128xf32>
    %58 = arith.addf %54, %57 : vector<2x128xf32>
    %59 = arith.mulf %35, %29 : vector<2x128xf32>
    %60 = arith.subf %59, %37 : vector<2x128xf32>
    %61 = arith.mulf %60, %17 : vector<2x128xf32>
    %62 = arith.addf %58, %61 : vector<2x128xf32>
    %63 = arith.addf %62, %9 : vector<2x128xf32>
    %64 = arith.mulf %36, %27 : vector<2x128xf32>
    %65 = arith.subf %64, %38 : vector<2x128xf32>
    %66 = arith.mulf %65, %13 : vector<2x128xf32>
    %67 = arith.mulf %36, %28 : vector<2x128xf32>
    %68 = arith.addf %67, %37 : vector<2x128xf32>
    %69 = arith.mulf %68, %15 : vector<2x128xf32>
    %70 = arith.addf %66, %69 : vector<2x128xf32>
    %71 = arith.mulf %36, %29 : vector<2x128xf32>
    %72 = arith.addf %30, %71 : vector<2x128xf32>
    %73 = arith.mulf %72, %17 : vector<2x128xf32>
    %74 = arith.addf %70, %73 : vector<2x128xf32>
    %75 = arith.addf %74, %11 : vector<2x128xf32>
    %76 = tpu.reciprocal %75 {approx = true} : vector<2x128xf32> -> vector<2x128xf32>
    %77 = arith.mulf %75, %76 : vector<2x128xf32>
    %cst_22 = arith.constant 2.000000e+00 : f32
    %78 = vector.broadcast %cst_22 : f32 to vector<2x128xf32>
    %79 = arith.subf %78, %77 : vector<2x128xf32>
    %80 = arith.mulf %76, %79 : vector<2x128xf32>
    %c0_23 = arith.constant 0 : index
    %81 = memref.load %arg1[%c0_23] : memref<4xf32, #tpu.memory_space<smem>>
    %c1_24 = arith.constant 1 : index
    %82 = memref.load %arg1[%c1_24] : memref<4xf32, #tpu.memory_space<smem>>
    %c2_25 = arith.constant 2 : index
    %83 = memref.load %arg1[%c2_25] : memref<4xf32, #tpu.memory_space<smem>>
    %c3_26 = arith.constant 3 : index
    %84 = memref.load %arg1[%c3_26] : memref<4xf32, #tpu.memory_space<smem>>
    %85 = arith.mulf %51, %80 : vector<2x128xf32>
    %86 = vector.broadcast %81 : f32 to vector<2x128xf32>
    %87 = arith.mulf %86, %85 : vector<2x128xf32>
    %88 = vector.broadcast %83 : f32 to vector<2x128xf32>
    %89 = arith.addf %87, %88 : vector<2x128xf32>
    %c0_27 = arith.constant 0 : index
    %c0_28 = arith.constant 0 : index
    %c0_29 = arith.constant 0 : index
    %90 = vector.load %arg4[%c0_27, %c0_28, %c0_29] : memref<2x2x128xf32, #tpu.memory_space<vmem>>, vector<1x2x128xf32>
    %91 = vector.shape_cast %90 : vector<1x2x128xf32> to vector<2x128xf32>
    %92 = vector.shape_cast %89 : vector<2x128xf32> to vector<1x2x128xf32>
    tpu.vector_store %arg4[%c0_27, %c0_28, %c0_29], %92 {strides = array<i32>} : memref<2x2x128xf32, #tpu.memory_space<vmem>>, vector<1x2x128xf32>,
    %93 = arith.mulf %63, %80 : vector<2x128xf32>
    %94 = vector.broadcast %82 : f32 to vector<2x128xf32>
    %95 = arith.mulf %94, %93 : vector<2x128xf32>
    %96 = vector.broadcast %84 : f32 to vector<2x128xf32>
    %97 = arith.addf %95, %96 : vector<2x128xf32>
    %c1_30 = arith.constant 1 : index
    %c0_31 = arith.constant 0 : index
    %c0_32 = arith.constant 0 : index
    %98 = vector.load %arg4[%c1_30, %c0_31, %c0_32] : memref<2x2x128xf32, #tpu.memory_space<vmem>>, vector<1x2x128xf32>
    %99 = vector.shape_cast %98 : vector<1x2x128xf32> to vector<2x128xf32>
    %100 = vector.shape_cast %97 : vector<2x128xf32> to vector<1x2x128xf32>
    tpu.vector_store %arg4[%c1_30, %c0_31, %c0_32], %100 {strides = array<i32>} : memref<2x2x128xf32, #tpu.memory_space<vmem>>, vector<1x2x128xf32>,
    return
  }
  func.func @transform_0(%arg0: i32) -> i32 {
    %c0_i32 = arith.constant 0 : i32
    %c0_i32_0 = arith.constant 0 : i32
    return %c0_i32 : i32
  }
  func.func @transform_1(%arg0: i32) -> (i32, i32, i32) {
    %c0_i32 = arith.constant 0 : i32
    %c0_i32_0 = arith.constant 0 : i32
    %c0_i32_1 = arith.constant 0 : i32
    return %c0_i32, %arg0, %c0_i32_0 : i32, i32, i32
  }
  func.func @transform_2(%arg0: i32) -> (i32, i32, i32) {
    %c0_i32 = arith.constant 0 : i32
    %c0_i32_0 = arith.constant 0 : i32
    %c0_i32_1 = arith.constant 0 : i32
    return %c0_i32, %arg0, %c0_i32_0 : i32, i32, i32
  }
  func.func @transform_3(%arg0: i32) -> (i32, i32, i32) {
    %c0_i32 = arith.constant 0 : i32
    %c0_i32_0 = arith.constant 0 : i32
    %c0_i32_1 = arith.constant 0 : i32
    return %c0_i32, %arg0, %c0_i32_0 : i32, i32, i32
  }
}

</mosaic_0001>

<bundles_post_ra>
// kernel: bundle_adjustment_forward.1
= control target key start
LH: loop header
LB: loop body
LE: loop exit
PB: predicated region body
PF: predicated region fallthrough
CT: control target
= control target key end

     0   :  { %8 = vsyncpa [#allocation3], 0  ;;  %s484_s15 = smov [#allocation2]   ;;  %s615_s0 = inlined_call_operand.vmem [shape: f32[4], index: 0, kind: input, shape index: {}]   ;;  %s616_s1 = inlined_call_operand.vmem [shape: f32[6,2,128], index: 1, kind: input, shape index: {}]   ;;  %s617_s2 = inlined_call_operand.vmem [shape: f32[3,2,128], index: 2, kind: input, shape index: {}]   ;;  %s618_s3 = inlined_call_operand.vmem [shape: f32[2,2,128], index: 3, kind: output, shape index: {}]  }
   0x1   :  { %s14_s14 = sshll.u32 %s615_s0, 4  ;;  %s15_s14 = int_to_ptr.vmem [resolvable:$true] %s14_s14 }
   0x2   :  { %17 = dma.vmem_to_smem %s15_s14, 16, %s484_s15, [#allocation3]  }
   0x3   :  { %482 = dma.done.wait [#allocation3], 16  }
   0x4   :  { %483 = vsyncadd [#allocation3], 4294967280 }
   0x5   :  { %26 = sfence }
   0x6   :  { %v27_v0 = vld [vmem:[%s616_s1] sm:$0x3]  ;;  %v441_v1 = vld [vmem:[%s616_s1 + $0x2] sm:$0x3]  ;;  %v442_v2 = vld [vmem:[%s616_s1 + $0x4] sm:$0x3] }
   0x7   :  { %v43_v3 = vmul.f32 %v27_v0, %v27_v0  ;;  %v44_v4 = vmul.f32 %v441_v1, %v441_v1  ;;  %v46_v5 = vmul.f32 %v442_v2, %v442_v2  ;;  %v485_v31 = vmov 683565275   ;;  %s419_s28 = sld [smem:[#allocation2]] }
   0x8   :  { %v486_v33 = vmov 2475754826   ;;  %v487_v35 = vmov 2131351028   ;;  %v488_v37 = vmov 2102212464  }
   0x9   :  { %v45_v6 = vadd.f32 %v44_v4, %v43_v3  ;;  %v489_v39 = vmov 920167782   ;;  %v490_v45 = vmov 1326507024   ;;  %s454_s29 = sld [smem:[#allocation2 + $0x1]] }
   0xa   :  { %s455_s30 = sld [smem:[#allocation2 + $0x2]] }
   0xb   :  { %v47_v7 = vadd.f32 %v46_v5, %v45_v6  ;;  %s456_s8 = sld [smem:[#allocation2 + $0x3]] }
   0xd   :  { %v48_v8 = vadd.f32 1e-16, %v47_v7 }
   0xf   :  { %466 = vrsqrt.f32 %v48_v8  ;;  %vm55_vm0 = vweird.f32 %v48_v8 }
  0x15   :  { %v467_v9 = vpop.eup %466 }
  0x16   :  { %v50_v10 = vmul.f32 %v467_v9, %v48_v8  ;;  %vm56_vm1 = vweird.f32 %v467_v9 }
  0x17   :  { %vm57_vm2 = vmor %vm55_vm0, %vm56_vm1 }
  0x18   :  { %v51_v11 = vmul.f32 %v467_v9, %v50_v10 }
  0x1a   :  { %v52_v12 = vmul.f32 0.5, %v51_v11 }
  0x1c   :  { %v53_v13 = vsub.f32 1.5, %v52_v12 }
  0x1e   :  { %v54_v14 = vmul.f32 %v467_v9, %v53_v13 }
  0x20   :  { %v58_v15 = vsel %vm57_vm2, %v467_v9, %v54_v14 }
  0x21   :  { %v524_v16 = vmul.f32 %v58_v15, %v47_v7  ;;  %v526_v17 = vmul.f32 %v58_v15, %v27_v0  ;;  %v528_v18 = vmul.f32 %v441_v1, %v58_v15  ;;  %v530_v19 = vmul.f32 %v442_v2, %v58_v15 }
  0x23   :  { %v66_v20 = vand.u32 2139095040, %v524_v16  ;;  %v63_v22 = vand.u32 2147483647, %v524_v16  ;;  %vm65_vm15 = vcmp.lt.s32.totalorder %v524_v16, 0 }
  0x25   :  { %v67_v21 = vshrl.u32 %v66_v20, 23  ;;  %v70_v25 = vand.u32 8388607, %v63_v22  ;;  %vm64_vm0 = vcmp.le.f32.partialorder %v63_v22, 0.7853982 }
  0x27   :  { %v448_v23 = vadd.s32 4294967169, %v67_v21  ;;  %v71_v28 = vor.u32 8388608, %v70_v25 }
  0x29   :  { %v73_v24 = vadd.s32 1, %v448_v23  ;;  %v539_v47 = vshll.u32 %v71_v28, 8 }
  0x2b   :  { %vm74_vm3 = vcmp.gt.s32.totalorder %v73_v24, 0  ;;  %v112_v59 = vand.u32 65535, %v539_v47  ;;  %v113_v60 = vshrl.u32 %v539_v47, 16 }
  0x2c   :  { %v75_v26 = vsel %vm74_vm3, %v73_v24, 0  ;;  %v491_v24 = vmov 0  }
  0x2d   :  { %v77_v27 = vand.u32 31, %v75_v26  ;;  %v536_v29 = vshrl.u32 %v75_v26, 5 }
  0x2f   :  { %v78_v30 = vsub.s32 32, %v77_v27  ;;  %v80_v32 = vshll.u32 %v485_v31, %v77_v27  ;;  %v83_v34 = vshll.u32 %v486_v33, %v77_v27  ;;  %v86_v36 = vshll.u32 %v487_v35, %v77_v27 }
  0x30   :  { %v89_v38 = vshll.u32 %v488_v37, %v77_v27  ;;  %v92_v40 = vshll.u32 %v489_v39, %v77_v27  ;;  %vm95_vm4 = vcmp.lt.s32.totalorder %v536_v29, 1  ;;  %vm98_vm5 = vcmp.lt.s32.totalorder %v536_v29, 4 }
  0x31   :  { %v81_v41 = vshrl.u32 %v486_v33, %v78_v30  ;;  %v84_v42 = vshrl.u32 %v487_v35, %v78_v30  ;;  %v87_v43 = vshrl.u32 %v488_v37, %v78_v30  ;;  %v90_v44 = vshrl.u32 %v489_v39, %v78_v30 }
  0x32   :  { %v93_v46 = vshrl.u32 %v490_v45, %v78_v30  ;;  %vm97_vm6 = vcmp.lt.s32.totalorder %v536_v29, 3  ;;  %vm96_vm7 = vcmp.lt.s32.totalorder %v536_v29, 2  ;;  %v79_v3 = vshrl.u32 %v485_v31, %v78_v30 }
  0x33   :  { %v82_v48 = vor.u32 %v81_v41, %v80_v32  ;;  %v85_v49 = vor.u32 %v84_v42, %v83_v34  ;;  %v88_v50 = vor.u32 %v87_v43, %v86_v36  ;;  %v91_v51 = vor.u32 %v90_v44, %v89_v38 }
  0x34   :  { %v94_v52 = vor.u32 %v93_v46, %v92_v40 }
  0x35   :  { %v103_v53 = vsel %vm95_vm4, %v82_v48, %v85_v49  ;;  %v107_v54 = vsel %vm95_vm4, %v85_v49, %v88_v50  ;;  %v104_v55 = vsel %vm98_vm5, %v91_v51, 920167782  ;;  %v99_v20 = vsel %vm95_vm4, %v79_v3, %v82_v48 }
  0x36   :  { %v108_v56 = vsel %vm98_vm5, %v94_v52, 1326507024  ;;  %v105_v57 = vsel %vm97_vm6, %v88_v50, %v104_v55  ;;  %v100_v23 = vsel %vm98_vm5, %v88_v50, 2102212464 }
  0x37   :  { %v109_v58 = vsel %vm97_vm6, %v91_v51, %v108_v56  ;;  %v106_v61 = vsel %vm96_vm7, %v103_v53, %v105_v57  ;;  %v101_v34 = vsel %vm97_vm6, %v85_v49, %v100_v23 }
  0x38   :  { %v110_v62 = vsel %vm96_vm7, %v107_v54, %v109_v58  ;;  %v136_v1 = vand.u32 65535, %v106_v61  ;;  %v137_v2 = vshrl.u32 %v106_v61, 16  ;;  %v102_v42 = vsel %vm96_vm7, %v99_v20, %v101_v34 }
  0x39   :  { %v114_v63 = vand.u32 65535, %v110_v62  ;;  %v115_v0 = vshrl.u32 %v110_v62, 16  ;;  %v156_v46 = vmul.u32 %v539_v47, %v102_v42  ;;  %vm206_vm7 = vweird.f32 %v524_v16 }
  0x3a   :  { %v138_v7 = vmul.u32 %v136_v1, %v112_v59  ;;  %v139_v8 = vmul.u32 %v137_v2, %v112_v59  ;;  %v140_v9 = vmul.u32 %v136_v1, %v113_v60  ;;  %v141_v13 = vmul.u32 %v137_v2, %v113_v60 }
  0x3b   :  { %v116_v4 = vmul.u32 %v114_v63, %v112_v59  ;;  %v117_v5 = vmul.u32 %v115_v0, %v112_v59  ;;  %v118_v6 = vmul.u32 %v114_v63, %v113_v60  ;;  %v119_v10 = vmul.u32 %v115_v0, %v113_v60 }
  0x3c   :  { %v142_v14 = vshll.u32 %v139_v8, 16  ;;  %v144_v15 = vshll.u32 %v140_v9, 16  ;;  %v143_v32 = vshrl.u32 %v139_v8, 16  ;;  %v145_v38 = vshrl.u32 %v140_v9, 16 }
  0x3d   :  { %v120_v11 = vshll.u32 %v117_v5, 16  ;;  %v122_v12 = vshll.u32 %v118_v6, 16  ;;  %v121_v27 = vshrl.u32 %v117_v5, 16  ;;  %v123_v35 = vshrl.u32 %v118_v6, 16 }
  0x3e   :  { %vm146_vm9 = vc.u32 %v138_v7, %v142_v14  ;;  %v148_v26 = vadd.s32 %v142_v14, %v138_v7 }
  0x3f   :  { %vm124_vm8 = vc.u32 %v116_v4, %v120_v11  ;;  %v126_v21 = vadd.s32 %v120_v11, %v116_v4  ;;  %v147_v30 = vsel %vm146_vm9, 1, %v491_v24 }
  0x40   :  { %v125_v25 = vsel %vm124_vm8, 1, %v491_v24  ;;  %v149_v33 = vadd.s32 %v147_v30, %v141_v13  ;;  %vm150_vm11 = vc.u32 %v148_v26, %v144_v15  ;;  %v152_v41 = vadd.s32 %v148_v26, %v144_v15 }
  0x41   :  { %v127_v28 = vadd.s32 %v125_v25, %v119_v10  ;;  %vm128_vm10 = vc.u32 %v126_v21, %v122_v12  ;;  %v151_v37 = vsel %vm150_vm11, 1, %v491_v24 }
  0x42   :  { %v129_v31 = vsel %vm128_vm10, 1, %v491_v24  ;;  %v153_v39 = vadd.s32 %v151_v37, %v149_v33 }
  0x43   :  { %v131_v36 = vadd.s32 %v129_v31, %v127_v28 }
  0x44   :  { %v154_v43 = vadd.s32 %v153_v39, %v143_v32 }
  0x45   :  { %v132_v40 = vadd.s32 %v131_v36, %v121_v27 }
  0x46   :  { %v155_v45 = vadd.s32 %v154_v43, %v145_v38 }
  0x47   :  { %v133_v44 = vadd.s32 %v132_v40, %v123_v35 }
  0x48   :  { %v159_v48 = vadd.s32 1, %v155_v45 }
  0x49   :  { %vm158_vm12 = vc.u32 %v133_v44, %v152_v41  ;;  %v157_v29 = vadd.s32 %v152_v41, %v133_v44 }
  0x4a   :  { %v160_v50 = vsel %vm158_vm12, %v159_v48, %v155_v45 }
  0x4b   :  { %v161_v51 = vadd.s32 %v160_v50, %v156_v46 }
  0x4d   :  { %v162_v49 = vadd.s32 536870912, %v161_v51 }
  0x4f   :  { %v163_v52 = vshrl.u32 %v162_v49, 30 }
  0x51   :  { %v164_v53 = vshll.u32 %v163_v52, 30  ;;  %v187_v7 = vsub.s32 4, %v163_v52 }
  0x53   :  { %v165_v54 = vsub.s32 %v161_v51, %v164_v53  ;;  %v188_v11 = vsel %vm65_vm15, %v187_v7, %v163_v52 }
  0x54   :  { %v190_v14 = vsel %vm64_vm0, 0, %v188_v11 }
  0x55   :  { %vm166_vm13 = vcmp.lt.s32.totalorder %v165_v54, 0  ;;  %v167_v55 = vsub.s32 0, %v165_v54  ;;  %v361_v21 = vadd.s32 3, %v190_v14  ;;  %v207_v27 = vand.u32 3, %v190_v14 }
  0x57   :  { %v168_v56 = vsel %vm166_vm13, %v167_v55, %v165_v54  ;;  %v362_v28 = vand.u32 3, %v361_v21  ;;  %vm212_vm1 = vcmp.eq.s32.totalorder %v207_v27, 2  ;;  %vm208_vm3 = vcmp.lt.s32.totalorder %v207_v27, 2 }
  0x58   :  { %v169_v57 = vclz %v168_v56  ;;  %vm209_vm4 = vcmp.eq.s32.totalorder %v207_v27, 0  ;;  %v444_v27 = vld [vmem:[%s616_s1 + $0x8] sm:$0x3] }
  0x59   :  { %vm367_vm2 = vcmp.eq.s32.totalorder %v362_v28, 2  ;;  %vm364_vm5 = vcmp.eq.s32.totalorder %v362_v28, 0  ;;  %vm363_vm6 = vcmp.lt.s32.totalorder %v362_v28, 2 }
  0x5a   :  { %v449_v58 = vadd.s32 4294967294, %v169_v57 }
  0x5c   :  { %vm450_vm14 = vcmp.lt.s32.totalorder %v449_v58, 0 }
  0x5d   :  { %v172_v59 = vsel %vm450_vm14, 0, %v449_v58 }
  0x5e   :  { %v173_v60 = vsub.s32 32, %v172_v59  ;;  %v174_v61 = vshll.u32 %v165_v54, %v172_v59  ;;  %v177_v62 = vsub.s32 4294967266, %v172_v59  ;;  %v446_v59 = vld [vmem:[%s617_s2 + $0x2] sm:$0x3] }
  0x60   :  { %v175_v47 = vshrl.u32 %v157_v29, %v173_v60  ;;  %v178_v63 = vadd.s32 127, %v177_v62  ;;  %v38_v29 = vld [vmem:[%s617_s2] sm:$0x3] }
  0x62   :  { %v176_v0 = vor.u32 %v175_v47, %v174_v61  ;;  %v179_v1 = vshll.u32 %v178_v63, 23  ;;  %v447_v63 = vld [vmem:[%s617_s2 + $0x4] sm:$0x3] }
  0x64   :  { %v180_v2 = vor.u32 4788187, %v179_v1  ;;  %v183_v3 = vcvt.s32.f32 %v176_v0 }
  0x66   :  { %v181_v4 = vand.u32 2147483647, %v180_v2 }
  0x68   :  { %v184_v5 = vmul.f32 %v183_v3, %v181_v4 }
  0x6a   :  { %v185_v6 = vxor.u32 2147483648, %v184_v5 }
  0x6c   :  { %v186_v8 = vsel %vm65_vm15, %v185_v6, %v184_v5 }
  0x6d   :  { %v189_v9 = vsel %vm64_vm0, %v524_v16, %v186_v8 }
  0x6e   :  { %v191_v10 = vmul.f32 %v189_v9, %v189_v9 }
  0x70   :  { %v192_v12 = vmul.f32 -0.001358992, %v191_v10  ;;  %v199_v13 = vmul.f32 -0.00019511016, %v191_v10 }
  0x72   :  { %v193_v15 = vadd.f32 0.041655596, %v192_v12  ;;  %v200_v20 = vadd.f32 0.008332121, %v199_v13 }
  0x74   :  { %v194_v23 = vmul.f32 %v193_v15, %v191_v10  ;;  %v201_v24 = vmul.f32 %v200_v20, %v191_v10 }
  0x76   :  { %v195_v25 = vadd.f32 -0.4999988, %v194_v23  ;;  %v202_v26 = vadd.f32 -0.16666654, %v201_v24  ;;  %v445_v23 = vld [vmem:[%s616_s1 + $0xa] sm:$0x3] }
  0x78   :  { %v196_v22 = vmul.f32 %v195_v25, %v191_v10  ;;  %v203_v30 = vmul.f32 %v202_v26, %v191_v10 }
  0x7a   :  { %v197_v31 = vadd.f32 1.0, %v196_v22  ;;  %v204_v32 = vadd.f32 1.0, %v203_v30 }
  0x7c   :  { %v205_v33 = vmul.f32 %v204_v32, %v189_v9  ;;  %v213_v34 = vxor.u32 2147483648, %v197_v31 }
  0x7e   :  { %v210_v35 = vxor.u32 2147483648, %v205_v33  ;;  %v214_v36 = vsel %vm212_vm1, %v213_v34, %v205_v33  ;;  %v369_v37 = vsel %vm367_vm2, %v213_v34, %v205_v33  ;;  %v424_v33 = vstv %s419_s28 }
  0x7f   :  { %v430_v34 = vstv %s454_s29 }
  0x80   :  { %v211_v38 = vsel %vm209_vm4, %v197_v31, %v210_v35  ;;  %v366_v39 = vsel %vm364_vm5, %v197_v31, %v210_v35 }
  0x81   :  { %v215_v40 = vsel %vm208_vm3, %v211_v38, %v214_v36  ;;  %v370_v41 = vsel %vm363_vm6, %v366_v39, %v369_v37  ;;  %v426_v37 = vstv %s455_s30  ;;  %v432_v38 = vstv %s456_s8 }
  0x82   :  { %v216_v42 = vsel %vm206_vm7, nan, %v215_v40  ;;  %v371_v43 = vsel %vm206_vm7, nan, %v370_v41 }
  0x83   :  { %v372_v44 = vsub.f32 1.0, %v216_v42  ;;  %v378_v50 = vmul.f32 %v371_v43, %v530_v19  ;;  %v376_v51 = vmul.f32 %v371_v43, %v526_v17  ;;  %v377_v49 = vmul.f32 %v371_v43, %v528_v18 }
  0x85   :  { %v373_v45 = vmul.f32 %v372_v44, %v526_v17  ;;  %v374_v46 = vmul.f32 %v372_v44, %v528_v18  ;;  %v375_v48 = vmul.f32 %v372_v44, %v530_v19 }
  0x87   :  { %v379_v16 = vmul.f32 %v373_v45, %v526_v17  ;;  %v382_v52 = vmul.f32 %v373_v45, %v528_v18  ;;  %v386_v53 = vmul.f32 %v373_v45, %v530_v19  ;;  %v391_v54 = vmul.f32 %v374_v46, %v526_v17 }
  0x88   :  { %v394_v55 = vmul.f32 %v374_v46, %v528_v18  ;;  %v398_v56 = vmul.f32 %v374_v46, %v530_v19  ;;  %v403_v57 = vmul.f32 %v375_v48, %v526_v17  ;;  %v406_v58 = vmul.f32 %v375_v48, %v528_v18 }
  0x89   :  { %v380_v60 = vadd.f32 %v379_v16, %v216_v42  ;;  %v383_v61 = vsub.f32 %v382_v52, %v378_v50  ;;  %v387_v62 = vadd.f32 %v386_v53, %v377_v49  ;;  %v392_v47 = vadd.f32 %v391_v54, %v378_v50 }
  0x8a   :  { %v395_v0 = vadd.f32 %v394_v55, %v216_v42  ;;  %v399_v17 = vsub.f32 %v398_v56, %v376_v51  ;;  %v404_v1 = vsub.f32 %v403_v57, %v377_v49  ;;  %v407_v18 = vadd.f32 %v406_v58, %v376_v51 }
  0x8b   :  { %v381_v2 = vmul.f32 %v380_v60, %v38_v29  ;;  %v384_v3 = vmul.f32 %v446_v59, %v383_v61  ;;  %v388_v4 = vmul.f32 %v447_v63, %v387_v62  ;;  %v393_v5 = vmul.f32 %v392_v47, %v38_v29 }
  0x8c   :  { %v396_v6 = vmul.f32 %v446_v59, %v395_v0  ;;  %v400_v7 = vmul.f32 %v447_v63, %v399_v17  ;;  %v405_v8 = vmul.f32 %v404_v1, %v38_v29  ;;  %v408_v9 = vmul.f32 %v446_v59, %v407_v18 }
  0x8d   :  { %v385_v10 = vadd.f32 %v384_v3, %v381_v2  ;;  %v410_v11 = vmul.f32 %v375_v48, %v530_v19  ;;  %v443_v19 = vld [vmem:[%s616_s1 + $0x6] sm:$0x3] }
  0x8e   :  { %v397_v12 = vadd.f32 %v396_v6, %v393_v5  ;;  %v409_v13 = vadd.f32 %v408_v9, %v405_v8 }
  0x8f   :  { %v389_v14 = vadd.f32 %v388_v4, %v385_v10  ;;  %v411_v15 = vadd.f32 %v410_v11, %v216_v42 }
  0x90   :  { %v401_v20 = vadd.f32 %v400_v7, %v397_v12 }
  0x91   :  { %v412_v21 = vmul.f32 %v447_v63, %v411_v15  ;;  %v390_v22 = vadd.f32 %v443_v19, %v389_v14 }
  0x92   :  { %v402_v30 = vadd.f32 %v444_v27, %v401_v20 }
  0x93   :  { %v413_v24 = vadd.f32 %v412_v21, %v409_v13 }
  0x95   :  { %v414_v25 = vadd.f32 %v445_v23, %v413_v24 }
  0x97   :  { %468 = vrcp.f32 %v414_v25 }
  0x9d   :  { %v469_v26 = vpop.eup %468 }
  0x9e   :  { %v416_v28 = vmul.f32 %v469_v26, %v414_v25 }
  0xa0   :  { %v417_v31 = vsub.f32 2.0, %v416_v28 }
  0xa2   :  { %v418_v32 = vmul.f32 %v469_v26, %v417_v31 }
  0xa4   :  { %v423_v35 = vmul.f32 %v418_v32, %v390_v22  ;;  %v429_v36 = vmul.f32 %v418_v32, %v402_v30 }
  0xa6   :  { %v425_v39 = vmul.f32 %v424_v33, %v423_v35  ;;  %v431_v40 = vmul.f32 %v430_v34, %v429_v36 }
  0xa8   :  { %v427_v41 = vadd.f32 %v426_v37, %v425_v39  ;;  %v433_v42 = vadd.f32 %v432_v38, %v431_v40 }
  0xaa   :  { %428 = vst [vmem:[%s618_s3] sm:$0x3] %v427_v41 }
  0xab   :  { %457 = vst [vmem:[%s618_s3 + $0x2] sm:$0x3] %v433_v42 }
  0xac   :  { %440 = vsyncpa [#allocation3], 1 }

</bundles_post_ra>
